<compile_context>
chip_gen: v7x
topology: tpu7x:2x2x1
jax: 0.10.0
libtpu: 0.0.40
codegen_flags: <defaults>
</compile_context>

<pallas_src>
import functools

import numpy as np
import jax
import jax.numpy as jnp
from jax.experimental import pallas as pl
from jax.experimental.pallas import tpu as pltpu

FILT_LEN = 8  # db4 has 8 taps

# pywt.Wavelet('db4').dec_lo / dec_hi
DEC_LO = np.array(
    [-0.010597401784997278, 0.032883011666982945, 0.030841381835986965,
     -0.18703481171888114, -0.02798376941698385, 0.6308807679295904,
     0.7148465705525415, 0.23037781330885523], dtype=np.float64)
DEC_HI = np.array(
    [-0.23037781330885523, 0.7148465705525415, -0.6308807679295904,
     -0.02798376941698385, 0.18703481171888114, 0.030841381835986965,
     -0.032883011666982945, -0.010597401784997278], dtype=np.float64)

_MATMUL_DTYPE = jnp.bfloat16   # MXU-native on v5e/v6e/v7x; accumulate in f32


# ---------------- host-side (trace-time) plan, cached ----------------

def _round_up(v, m):
    return ((v + m - 1) // m) * m


def _sym_reflect(i, n):
    """pywt / np.pad 'symmetric' (half-sample) index reflection into [0, n)."""
    period = 2 * n
    i %= period
    if i < 0:
        i += period
    return i if i < n else period - 1 - i


def _folded_band_matrix(filt, n_in, n_out):
    """W (n_in, n_out) such that (a @ W)[o] == sum_j filt_rev[j]*a_sym[2o+j-6],
    i.e. pywt's downsampled convolution with the symmetric boundary extension
    folded into the boundary columns (no padded copy of the signal needed)."""
    filt_rev = np.asarray(filt, np.float64)[::-1]
    w = np.zeros((n_in, n_out), np.float64)
    for o in range(n_out):
        for j in range(FILT_LEN):
            i = _sym_reflect(2 * o + j - (FILT_LEN - 2), n_in)
            w[i, o] += filt_rev[j]
    return w


@functools.lru_cache(maxsize=None)
def _plan(n, levels):
    """Composed (n, total_pad) band matrix, packed-slab layout and per-column
    band ids.  Depends only on (signal length, levels) -> computed once on the
    host in float64 and baked as constants under jit."""
    chain = np.eye(n, dtype=np.float64)          # running low-pass composition
    det_mats = []                                # composed cD_1 ... cD_L maps
    cur = n
    for _ in range(levels):
        m = (cur + FILT_LEN - 1) // 2            # pywt length recursion
        w_lo = _folded_band_matrix(DEC_LO, cur, m)
        w_hi = _folded_band_matrix(DEC_HI, cur, m)
        det_mats.append(chain @ w_hi)            # (n, m)
        chain = chain @ w_lo                     # (n, m)
        cur = m
    band_mats = [chain] + det_mats[::-1]         # [cA_L, cD_L, ..., cD_1]
    band_lens = tuple(bm.shape[1] for bm in band_mats)

    offs, acc = [], 0
    for l in band_lens:
        offs.append(acc)
        acc += l
    total = acc
    total_pad = _round_up(total, 128)            # lane-dense slab width

    w_all = np.zeros((n, total_pad), np.float64)       # zero pad-tail columns
    band_id = np.full((total_pad,), levels + 1, np.int32)  # pad -> extra slot
    for j, (o, bm) in enumerate(zip(offs, band_mats)):
        w_all[:, o:o + bm.shape[1]] = bm
        band_id[o:o + bm.shape[1]] = j
    return w_all.astype(np.float32), band_lens, tuple(offs), total_pad, band_id


# ---------------- the single fused Pallas kernel ----------------

def _make_kernel(bt, total_pad, valid_rows, mask_rows, compute_dtype):
    def kernel(x_ref, w_ref, scale_ref, shift_ref, out_ref):
        # One lane-dense MXU pass: every band (and the zero pad tail) at once.
        slab = jnp.dot(x_ref[...].astype(compute_dtype), w_ref[...],
                       preferred_element_type=jnp.float32)
        # Fused learnable per-band affine as one full-width VPU op
        # (pad columns have scale == shift == 0, so the tail stays zero).
        y = slab * scale_ref[...] + shift_ref[...]
        if mask_rows:
            # Keep padded batch rows exactly zero (the additive shift would
            # otherwise leak into rows >= B of the raw slab).
            row = (pl.program_id(0) * bt
                   + jax.lax.broadcasted_iota(jnp.int32, (bt, total_pad), 0))
            y = jnp.where(row < valid_rows, y, 0.0)
        out_ref[...] = y                          # single full-width store
    return kernel


# ---------------- forward ----------------

@functools.partial(jax.jit, static_argnames=("levels",))
def wavelet_bands(x, wavelet_weights, wavelet_bias, *, levels=4):
    """Stacked forward: list of (B, len_j) float32 arrays, bands ordered
    [cA_L, cD_L, ..., cD_1], each scaled/shifted by the learnable params."""
    x = jnp.asarray(x, jnp.float32)
    B, N = x.shape
    w_all_np, band_lens, band_offs, total_pad, band_id_np = _plan(N, levels)

    # learnable per-band affine, expanded to full-width (1, total_pad) rows
    w_flat = jnp.reshape(jnp.asarray(wavelet_weights, jnp.float32), (-1,))
    b_flat = jnp.reshape(jnp.asarray(wavelet_bias, jnp.float32), (-1,))
    if w_flat.shape[0] < levels + 1 or b_flat.shape[0] < levels + 1:
        # wavedec yields levels+1 bands; the upstream torch module allocates
        # only `levels` rows (its forward would IndexError) — require levels+1
        # instead of silently truncating/misreading.
        raise ValueError(
            f"wavelet_weights/wavelet_bias need >= {levels + 1} entries, got "
            f"{w_flat.shape[0]} and {b_flat.shape[0]}")
    scale_ext = jnp.concatenate([w_flat[:levels + 1],
                                 jnp.zeros((1,), jnp.float32)])
    shift_ext = jnp.concatenate([b_flat[:levels + 1],
                                 jnp.zeros((1,), jnp.float32)])
    band_id = jnp.asarray(band_id_np)             # pad columns -> zero affine
    scale_row = scale_ext[band_id][None, :]       # (1, total_pad)
    shift_row = shift_ext[band_id][None, :]       # (1, total_pad)

    # batch tiling: pad only to a sublane multiple; >= 2 tiles when B >= 16 so
    # ("parallel",) can shard the batch across v7x's two TensorCores.
    if B >= 16:
        bt = min(128, _round_up((B + 1) // 2, 8))
    else:
        bt = _round_up(max(B, 1), 8)
    Bp = _round_up(B, bt)                         # pad waste < bt
    x_p = jnp.pad(x, ((0, Bp - B), (0, 0))) if Bp != B else x

    w_all = jnp.asarray(w_all_np, _MATMUL_DTYPE)  # baked constant under jit

    w_bytes = int(w_all.size) * w_all.dtype.itemsize
    tile_bytes = bt * N * 4 + bt * total_pad * 4 + 2 * total_pad * 4
    vmem_limit = int(min(128 << 20,
                         max(32 << 20, 2 * (w_bytes + tile_bytes) + (4 << 20))))

    slab = pl.pallas_call(
        _make_kernel(bt, total_pad, B, Bp != B, _MATMUL_DTYPE),
        grid=(Bp // bt,),
        out_shape=jax.ShapeDtypeStruct((Bp, total_pad), jnp.float32),
        in_specs=[
            pl.BlockSpec((bt, N), lambda i: (i, 0)),
            # grid-invariant blocks (compile-time weight constant, affine rows)
            pl.BlockSpec((N, total_pad), lambda i: (0, 0)),
            pl.BlockSpec((1, total_pad), lambda i: (0, 0)),
            pl.BlockSpec((1, total_pad), lambda i: (0, 0)),
        ],
        out_specs=pl.BlockSpec((bt, total_pad), lambda i: (i, 0)),
        compiler_params=pltpu.CompilerParams(
            dimension_semantics=("parallel",),
            vmem_limit_bytes=vmem_limit),
        cost_estimate=pl.CostEstimate(
            flops=2 * Bp * N * total_pad,
            transcendentals=0,
            bytes_accessed=(Bp * N * 4 + w_bytes + Bp * total_pad * 4
                            + 2 * total_pad * 4)),
    )(x_p, w_all, scale_row, shift_row)

    return [slab[:B, band_offs[j]:band_offs[j] + band_lens[j]]
            for j in range(levels + 1)]


def learnable_wavelet_transform(x, wavelet_weights, wavelet_bias, levels=4):
    """Mirrors the torch module's output structure: list over batch of lists of
    1-D per-band arrays, ordered [cA_L, cD_L, ..., cD_1]."""
    bands = wavelet_bands(x, wavelet_weights, wavelet_bias, levels=levels)
    B = x.shape[0]
    return [[bands[j][i] for j in range(levels + 1)] for i in range(B)]


# ---------------- independent numpy reference for self-check ----------------

def _dwt_band_ref(a, filt):
    """Single-level decimated db4 convolution with 'symmetric' padding,
    implemented via np.pad (independent of the folded/composed matrices)."""
    n = a.shape[1]
    m = (n + FILT_LEN - 1) // 2
    ap = np.pad(np.asarray(a, np.float64),
                ((0, 0), (FILT_LEN - 2, FILT_LEN - 1)), mode="symmetric")
    fr = np.asarray(filt, np.float64)[::-1]
    out = np.empty((a.shape[0], m), np.float64)
    for o in range(m):
        out[:, o] = ap[:, 2 * o:2 * o + FILT_LEN] @ fr
    return out


def _reference_bands(x_np, w_np, b_np, levels):
    a = np.asarray(x_np, np.float64)
    dets = []
    for _ in range(levels):
        dets.append(_dwt_band_ref(a, DEC_HI))
        a = _dwt_band_ref(a, DEC_LO)
    bands = [a] + dets[::-1]
    w_np = np.asarray(w_np, np.float64).reshape(-1)
    b_np = np.asarray(b_np, np.float64).reshape(-1)
    return [bands[j] * w_np[j] + b_np[j] for j in range(levels + 1)]


if __name__ == "__main__":
    LEVELS = 4
    B, N = 2, 64  # small batch of 1-D signals (x[i] is a 1-D signal in the ref)

    key = jax.random.PRNGKey(0)
    kw, kb, kx = jax.random.split(key, 3)
    # TODO(synk): the reference __init__ declares (levels, 1) params but its
    # forward indexes levels+1 wavedec bands (would IndexError in torch); we
    # allocate levels+1 rows so every band gets a learnable weight/bias.
    wavelet_weights = jax.random.normal(kw, (LEVELS + 1, 1), jnp.float32)
    wavelet_bias = jax.random.normal(kb, (LEVELS + 1, 1), jnp.float32)
    x = jax.random.normal(kx, (B, N), jnp.float32)

    out = learnable_wavelet_transform(x, wavelet_weights, wavelet_bias, LEVELS)
    jax.block_until_ready(out)

    # band lengths follow pywt's floor((n+7)/2) recursion
    expected_lens = [10, 10, 14, 21, 35]
    assert [int(c.shape[0]) for c in out[0]] == expected_lens
    assert all(c.dtype == jnp.float32 for row in out for c in row)

    # numerical self-check against an independent float64 numpy evaluation;
    # tolerance sized for the bf16 MXU inputs (f32 accumulation).
    ref = _reference_bands(np.asarray(x), np.asarray(wavelet_weights),
                           np.asarray(wavelet_bias), LEVELS)
    for j in range(LEVELS + 1):
        got = np.stack([np.asarray(out[i][j]) for i in range(B)])
        np.testing.assert_allclose(got, ref[j], rtol=2e-2, atol=2e-2)

    print("KERNEL_OK")
</pallas_src>

<mosaic_0001>
module attributes {stable_mosaic.version = 11 : i64} {
  func.func @kernel(%arg0: i32, %arg1: memref<8x64xf32, #tpu.memory_space<vmem>>, %arg2: memref<64x128xbf16, #tpu.memory_space<vmem>>, %arg3: memref<1x128xf32, #tpu.memory_space<vmem>>, %arg4: memref<1x128xf32, #tpu.memory_space<vmem>>, %arg5: memref<8x128xf32, #tpu.memory_space<vmem>>) attributes {dimension_semantics = [#tpu.dimension_semantics<parallel>], iteration_bounds = array<i64: 1>, scalar_prefetch = 0 : i64, scratch_operands = 0 : i64, tpu.core_type = #tpu.core_type<tc>, window_params = [{transform_indices = @transform_0, window_bounds = array<i64: 8, 64>}, {pipeline_mode = #tpu.pipeline_mode<synchronous>, transform_indices = @transform_1, window_bounds = array<i64: 64, 128>}, {pipeline_mode = #tpu.pipeline_mode<synchronous>, transform_indices = @transform_2, window_bounds = array<i64: 1, 128>}, {pipeline_mode = #tpu.pipeline_mode<synchronous>, transform_indices = @transform_3, window_bounds = array<i64: 1, 128>}, {transform_indices = @transform_4, window_bounds = array<i64: 8, 128>}]} {
    %c0 = arith.constant 0 : index
    %c0_0 = arith.constant 0 : index
    %0 = vector.load %arg1[%c0, %c0_0] : memref<8x64xf32, #tpu.memory_space<vmem>>, vector<8x64xf32>
    %1 = arith.truncf %0 : vector<8x64xf32> to vector<8x64xbf16>
    %c0_1 = arith.constant 0 : index
    %c0_2 = arith.constant 0 : index
    %2 = vector.load %arg2[%c0_1, %c0_2] : memref<64x128xbf16, #tpu.memory_space<vmem>>, vector<64x128xbf16>
    %cst = arith.constant dense<0.000000e+00> : vector<8x128xf32>
    %3 = tpu.matmul %1, %2, %cst {dimension_numbers = #tpu.dot_dimension_numbers<[1], [0], [0], [1], [0, 0, 1, 1], [], []>} : vector<8x64xbf16>, vector<64x128xbf16>, vector<8x128xf32> -> vector<8x128xf32>
    %c0_3 = arith.constant 0 : index
    %c0_4 = arith.constant 0 : index
    %4 = vector.load %arg3[%c0_3, %c0_4] : memref<1x128xf32, #tpu.memory_space<vmem>>, vector<1x128xf32>
    %5 = vector.broadcast %4 : vector<1x128xf32> to vector<8x128xf32>
    %6 = arith.mulf %3, %5 : vector<8x128xf32>
    %c0_5 = arith.constant 0 : index
    %c0_6 = arith.constant 0 : index
    %7 = vector.load %arg4[%c0_5, %c0_6] : memref<1x128xf32, #tpu.memory_space<vmem>>, vector<1x128xf32>
    %8 = vector.broadcast %7 : vector<1x128xf32> to vector<8x128xf32>
    %9 = arith.addf %6, %8 : vector<8x128xf32>
    %c8_i32 = arith.constant 8 : i32
    %10 = arith.muli %arg0, %c8_i32 : i32
    %11 = tpu.iota {dimensions = array<i32: 0>} : vector<8x128xi32>
    %12 = vector.broadcast %10 : i32 to vector<8x128xi32>
    %13 = arith.addi %12, %11 : vector<8x128xi32>
    %c2_i32 = arith.constant 2 : i32
    %14 = vector.broadcast %c2_i32 : i32 to vector<8x128xi32>
    %15 = arith.cmpi slt, %13, %14 : vector<8x128xi32>
    %cst_7 = arith.constant 0.000000e+00 : f32
    %16 = vector.broadcast %cst_7 : f32 to vector<8x128xf32>
    %17 = arith.select %15, %9, %16 : vector<8x128xi1>, vector<8x128xf32>
    %c0_8 = arith.constant 0 : index
    %c0_9 = arith.constant 0 : index
    %18 = vector.load %arg5[%c0_8, %c0_9] : memref<8x128xf32, #tpu.memory_space<vmem>>, vector<8x128xf32>
    tpu.vector_store %arg5[%c0_8, %c0_9], %17 {strides = array<i32>} : memref<8x128xf32, #tpu.memory_space<vmem>>, vector<8x128xf32>,
    return
  }
  func.func @transform_0(%arg0: i32) -> (i32, i32) {
    %c0_i32 = arith.constant 0 : i32
    %c0_i32_0 = arith.constant 0 : i32
    return %arg0, %c0_i32 : i32, i32
  }
  func.func @transform_1(%arg0: i32) -> (i32, i32) {
    %c0_i32 = arith.constant 0 : i32
    %c0_i32_0 = arith.constant 0 : i32
    %c0_i32_1 = arith.constant 0 : i32
    return %c0_i32, %c0_i32_0 : i32, i32
  }
  func.func @transform_2(%arg0: i32) -> (i32, i32) {
    %c0_i32 = arith.constant 0 : i32
    %c0_i32_0 = arith.constant 0 : i32
    %c0_i32_1 = arith.constant 0 : i32
    return %c0_i32, %c0_i32_0 : i32, i32
  }
  func.func @transform_3(%arg0: i32) -> (i32, i32) {
    %c0_i32 = arith.constant 0 : i32
    %c0_i32_0 = arith.constant 0 : i32
    %c0_i32_1 = arith.constant 0 : i32
    return %c0_i32, %c0_i32_0 : i32, i32
  }
  func.func @transform_4(%arg0: i32) -> (i32, i32) {
    %c0_i32 = arith.constant 0 : i32
    %c0_i32_0 = arith.constant 0 : i32
    return %arg0, %c0_i32 : i32, i32
  }
}

</mosaic_0001>

<bundles_post_ra>
// kernel: wavelet_bands.1
= control target key start
LH: loop header
LB: loop body
LE: loop exit
PB: predicated region body
PF: predicated region fallthrough
CT: control target
= control target key end

     0   :  { %v154_v0 = vmov 0.0   ;;  %vm155_vm0 = vmmov 0   ;;  %vm52_vm1 = vcmask 523264   ;;  %v113_v7 = vlaneseq  ;;  %s205_s1 = inlined_call_operand.vmem [shape: bf16[64,128], index: 1, kind: input, shape index: {}]   ;;  %s206_s0 = inlined_call_operand.vmem [shape: f32[8,64], index: 0, kind: input, shape index: {}]   ;;  %s207_s2 = inlined_call_operand.vmem [shape: f32[1,128], index: 2, kind: input, shape index: {}]   ;;  %s208_s3 = inlined_call_operand.vmem [shape: f32[1,128], index: 3, kind: input, shape index: {}]   ;;  %s209_s4 = inlined_call_operand.vmem [shape: f32[8,128], index: 4, kind: output, shape index: {}]  }
   0x1   :  { %136 = vmatprep.subr.bf16.mxu0 %v154_v0  ;;  %v150_v1 = vld [vmem:[%s205_s1] sm:$0xff]   ;;  %144 = vmatprep.mubr.msk.bf16.mxu0 %vm155_vm0, %v154_v0  ;;  %v151_v2 = vld [vmem:[%s205_s1 + $0x8] sm:$0xff]   ;;  %v152_v3 = vld [vmem:[%s205_s1 + $0x10] sm:$0xff]  }
   0x2   :  { %137 = vmatpush3.bf16.msra.mxu0 %v150_v1  ;;  %v153_v4 = vld [vmem:[%s205_s1 + $0x18] sm:$0xff]   ;;  %v18_v5 = vld [vmem:[%s206_s0] sm:$0xff]  ;;  %v114_v9 = vshrl.u32 %v113_v7, 7 }
   0x3   :  { %138 = vmatprep.subr.bf16.mxu0 %v154_v0  ;;  %v19_v6 = vpack.c.bf16 %v18_v5, %v18_v5  ;;  %v129_v8 = vld [vmem:[%s207_s2] ss:$0 sm:$0xff] }
   0x4   :  { %v130_v11 = vld [vmem:[%s208_s3] ss:$0 sm:$0xff]  ;;  %vm117_vm2 = vcmp.lt.s32.totalorder %v114_v9, 2 }
   0x6   :  { %139 = vmatpush3.bf16.msra.mxu0 %v151_v2 }
   0x7   :  { %140 = vmatprep.subr.bf16.mxu0 %v154_v0 }
   0xa   :  { %141 = vmatpush3.bf16.msra.mxu0 %v152_v3 }
   0xb   :  { %142 = vmatprep.subr.bf16.mxu0 %v154_v0 }
   0xe   :  { %143 = vmatpush3.bf16.msra.mxu0 %v153_v4 }
  0x11   :  { %145 = vmatmul.mubr.msk.bf16.vlgmr.msra.gmra.mrb[0].mxu0 %vm52_vm1, %v19_v6 }
  0xe4   :  { %v90_v10 = vpop.f32.mrb[0].mxu0 }
  0xe5   :  { %v103_v12 = vmul.f32 %v129_v8, %v90_v10  ;;  %v146_v13 = vpop.f32.mrb[1].mxu0 }
  0xe6   :  { %v93_v14 = vpop.f32.mrb[2].mxu0 }
  0xe7   :  { %v111_v15 = vadd.f32 %v130_v11, %v103_v12  ;;  %v147_v16 = vpop.f32.mrb[3].mxu0 }
  0xe9   :  { %v118_v17 = vsel %vm117_vm2, %v111_v15, 0.0 }
  0xea   :  { %119 = vst [vmem:[%s209_s4] sm:$0xff] %v118_v17 }

</bundles_post_ra>
